<compile_context>
chip_gen: v6e
topology: v6e:2x2x1
jax: 0.10.0
libtpu: 0.0.40
codegen_flags: <defaults>
</compile_context>

<pallas_src>
import jax
import jax.numpy as jnp
from jax.experimental import pallas as pl
from jax.experimental.pallas import tpu as pltpu

_MXU_DTYPE = jnp.bfloat16
_MiB = 1024 * 1024


def _bgbert_kernel(x_ref, wc_ref, bc_ref, w1_ref, b1_ref, w2_ref, b2_ref,
                   w3_ref, b3_ref, o_ref):
    """x: (TB,S,H) bf16; wc: (F,S) bf16; bc: (F,1) f32; w1: (H,H) bf16; b1: (1,H) f32;
    w2: (H,H2) bf16; b2: (1,H2) f32; w3: (H2,C) bf16; b3: (1,C) f32; o: (TB,C) f32."""
    f32 = jnp.float32
    x = x_ref[...]                                   # bf16 -> feeds the MXU directly
    tb = x.shape[0]
    F, S = wc_ref.shape

    # --- Conv1d(seq_len -> fore_length, k=1): per-row (F,S)@(S,H), batched over TB.
    # (see header note on why the wide-matmul rewrite was not used)
    wc_b = jnp.broadcast_to(wc_ref[...][None, :, :], (tb, F, S))     # small bf16 operand
    y = jnp.einsum('bfs,bsh->bfh', wc_b, x, preferred_element_type=f32)
    y = jnp.maximum(y + bc_ref[...], 0.0)            # (F,1) bias bcast + ReLU1

    # --- mean over fore_length (sublane axis) -> (TB, H)
    pooled = jnp.sum(y, axis=1) * (1.0 / F)

    # --- fc1 + ReLU  (weights already bf16; accumulate f32)
    h1 = jnp.dot(pooled.astype(w1_ref.dtype), w1_ref[...],
                 preferred_element_type=f32) + b1_ref[...]
    h1 = jnp.maximum(h1, 0.0)

    # --- fc2 + ReLU
    h2 = jnp.dot(h1.astype(w2_ref.dtype), w2_ref[...],
                 preferred_element_type=f32) + b2_ref[...]
    h2 = jnp.maximum(h2, 0.0)

    # --- fc3 (logits)
    logits = jnp.dot(h2.astype(w3_ref.dtype), w3_ref[...],
                     preferred_element_type=f32) + b3_ref[...]

    # --- softmax over classes (lane dim); squeeze(-1) is a no-op for class_num > 1.
    m = jnp.max(logits, axis=-1, keepdims=True)
    e = jnp.exp(logits - m)
    o_ref[...] = (e / jnp.sum(e, axis=-1, keepdims=True)).astype(o_ref.dtype)


def _physical_vmem_bytes():
    """Per-TensorCore VMEM capacity; conservative 64 MiB fallback (safe on all gens)."""
    try:
        info = pltpu.get_tpu_info()
    except Exception:
        return 64 * _MiB
    for attr in ("vmem_capacity_bytes", "vmem_size_bytes", "vmem_bytes"):
        try:
            v = int(getattr(info, attr, 0) or 0)
        except Exception:
            v = 0
        if v > 0:
            return v
    return 64 * _MiB


def _num_tensorcores():
    """TensorCores per chip (v7x has 2); defaults to 1 if not discoverable."""
    try:
        info = pltpu.get_tpu_info()
        for attr in ("num_cores", "core_count", "num_tensorcores"):
            try:
                v = int(getattr(info, attr, 0) or 0)
            except Exception:
                v = 0
            if v > 0:
                return v
    except Exception:
        pass
    try:
        v = int(getattr(jax.devices()[0], "num_cores", 0) or 0)
        if v > 0:
            return v
    except Exception:
        pass
    return 1


def _plan(B, S, H, F, H2, C):
    """Pick the batch tile TB, tile count, and an explicit scoped-VMEM limit."""
    phys = _physical_vmem_bytes()
    n_cores = _num_tensorcores()

    # Generation-aware scoped-VMEM cap, leaving headroom for compiler scratch / sems:
    #   v7x-class TC (64 MiB physical): cap ~52 MiB.   v5e/v6e (128 MiB): cap ~104 MiB.
    if phys <= 64 * _MiB:
        cap = min(max(phys - 12 * _MiB, 16 * _MiB), 52 * _MiB)
    else:
        cap = min(max(phys - 24 * _MiB, 32 * _MiB), 104 * _MiB)

    bpe = 2  # bf16 for x and weights
    # Resident operands (constant index_map, still double-buffered by the pipeline)
    fixed = (2 * bpe * (F * S + H * H + H * H2 + H2 * C)      # bf16 weights, 2 buffers
             + 2 * 4 * (F + H + H2 + C)                       # f32 biases, 2 buffers
             + 2 * _MiB)                                      # misc compiler slack
    # Per batch-row VMEM: double-buffered bf16 x block (+1 operand-copy allowance),
    # broadcast wc operand, conv accumulator, pooled/h1/h2 temporaries (f32 + bf16
    # matmul copies), softmax temps and the double-buffered f32 output block.
    per_row = (3 * S * H * bpe
               + F * S * bpe
               + F * H * 4
               + 2 * H * (4 + bpe)
               + H2 * (4 + bpe)
               + 6 * C * 4)
    tb_max = max(1, (cap - fixed) // per_row)
    tb_max = int(min(tb_max, B, 1024))

    # Multi-TensorCore chips (v7x): keep at least one tile per core so the "parallel"
    # batch axis shards; only when B is large enough to keep 8-row output alignment.
    if n_cores > 1 and B >= 8 * n_cores:
        tb_max = min(tb_max, max(8, -(-B // n_cores)))

    if tb_max >= B:
        tb = B                                    # single full-batch tile
    else:
        tb = max(8, (tb_max // 8) * 8)            # tiled -> keep output block 8-aligned
        # Prefer an 8-aligned tile that divides B (avoids a ragged last block) when one
        # exists close to the budget-derived size; no jnp.pad copy in any case.
        d = tb
        while d >= 8:
            if B % d == 0:
                break
            d -= 8
        if d >= 8 and B % d == 0 and 2 * d >= tb:
            tb = d
        tb = min(tb, B)

    n_tiles = pl.cdiv(B, tb)
    need = fixed + per_row * tb + 4 * _MiB
    vmem_limit = int(min(max(cap, need), max(phys - 4 * _MiB, 16 * _MiB)))
    return tb, n_tiles, vmem_limit


def bgbert_forward(x, params):
    """Fused Pallas forward of BGBertClassification.

    x: (B, S, H) (any float dtype; streamed as bf16).
    params: (wc (F,S), bc (F,), w1 (H,H), b1 (H,), w2 (H,H2), b2 (H2,),
             w3 (H2,C), b3 (C,))  -- Linear weights stored as (in, out).
    Returns: (B, C) float32 softmax probabilities.
    """
    wc, bc, w1, b1, w2, b2, w3, b3 = params
    B, S, H = x.shape
    F = wc.shape[0]
    H2 = w2.shape[1]
    C = w3.shape[1]
    assert wc.shape == (F, S) and w1.shape == (H, H)
    assert w2.shape == (H, H2) and w3.shape == (H2, C) and C > 1

    cdt = _MXU_DTYPE
    # Stream x and all MXU-facing weights as bf16 (halves the dominant HBM read and the
    # resident-weight VMEM; removes per-tile cast churn in the kernel).  If x is already
    # bf16 upstream these casts are no-ops.
    x_b = x.astype(cdt)
    wc_b = wc.astype(cdt)
    w1_b = w1.astype(cdt)
    w2_b = w2.astype(cdt)
    w3_b = w3.astype(cdt)
    # Biases stay f32 (added to f32 accumulators); lane/sublane-friendly 2-D views.
    bc2 = bc.reshape(F, 1).astype(jnp.float32)
    b1_2 = b1.reshape(1, H).astype(jnp.float32)
    b2_2 = b2.reshape(1, H2).astype(jnp.float32)
    b3_2 = b3.reshape(1, C).astype(jnp.float32)

    TB, n_tiles, vmem_limit = _plan(B, S, H, F, H2, C)

    # Advisory cost estimate for XLA scheduling around the fused call.
    flops = 2 * B * (F * S * H + H * H + H * H2 + H2 * C)
    bytes_accessed = (2 * (B * S * H + F * S + H * H + H * H2 + H2 * C)
                      + 4 * (B * C + F + H + H2 + C))
    cost = pl.CostEstimate(flops=flops, transcendentals=B * C,
                           bytes_accessed=bytes_accessed)

    out = pl.pallas_call(
        _bgbert_kernel,
        out_shape=jax.ShapeDtypeStruct((B, C), jnp.float32),
        grid_spec=pltpu.PrefetchScalarGridSpec(
            num_scalar_prefetch=0,
            grid=(n_tiles,),
            in_specs=[
                pl.BlockSpec((TB, S, H), lambda i: (i, 0, 0)),   # x tile (pipelined, bf16)
                pl.BlockSpec((F, S), lambda i: (0, 0)),          # conv W (resident, bf16)
                pl.BlockSpec((F, 1), lambda i: (0, 0)),          # conv b (f32)
                pl.BlockSpec((H, H), lambda i: (0, 0)),          # fc1 W (bf16)
                pl.BlockSpec((1, H), lambda i: (0, 0)),          # fc1 b
                pl.BlockSpec((H, H2), lambda i: (0, 0)),         # fc2 W (bf16)
                pl.BlockSpec((1, H2), lambda i: (0, 0)),         # fc2 b
                pl.BlockSpec((H2, C), lambda i: (0, 0)),         # fc3 W (bf16)
                pl.BlockSpec((1, C), lambda i: (0, 0)),          # fc3 b
            ],
            out_specs=pl.BlockSpec((TB, C), lambda i: (i, 0)),
        ),
        compiler_params=pltpu.CompilerParams(
            dimension_semantics=("parallel",),
            vmem_limit_bytes=vmem_limit,
        ),
        cost_estimate=cost,
    )(x_b, wc_b, bc2, w1_b, b1_2, w2_b, b2_2, w3_b, b3_2)

    return out


def _reference(x, params):
    """Pure-JAX reference mirroring the kernel numerics (bf16 MXU operands, f32 acc)
    and the PyTorch module's forward."""
    wc, bc, w1, b1, w2, b2, w3, b3 = params
    cdt, f32 = _MXU_DTYPE, jnp.float32
    y = jnp.einsum('fs,bsh->bfh', wc.astype(cdt), x.astype(cdt),
                   preferred_element_type=f32)
    y = jnp.maximum(y + bc[None, :, None], 0.0)
    pooled = jnp.mean(y, axis=1)
    h1 = jnp.maximum(jnp.dot(pooled.astype(cdt), w1.astype(cdt),
                             preferred_element_type=f32) + b1, 0.0)
    h2 = jnp.maximum(jnp.dot(h1.astype(cdt), w2.astype(cdt),
                             preferred_element_type=f32) + b2, 0.0)
    logits = jnp.dot(h2.astype(cdt), w3.astype(cdt),
                     preferred_element_type=f32) + b3
    return jax.nn.softmax(logits, axis=-1)


if __name__ == "__main__":
    key = jax.random.PRNGKey(0)
    ks = jax.random.split(key, 9)

    # batch=2, seq_len=8, fore_length=4, hidden=32, class_num=4
    B, S, F, H, C = 2, 8, 4, 32, 4
    H2 = H // 2

    x = jax.random.normal(ks[0], (B, S, H), dtype=jnp.float32)

    def linear_init(kw, kb, fan_in, fan_out):
        bound = 1.0 / (fan_in ** 0.5)
        w = jax.random.uniform(kw, (fan_in, fan_out), minval=-bound,
                               maxval=bound, dtype=jnp.float32)
        b = jax.random.uniform(kb, (fan_out,), minval=-bound,
                               maxval=bound, dtype=jnp.float32)
        return w, b

    # Conv1d(seq_len -> fore_length, kernel_size=1): weight (F, S), bias (F,).
    bound_c = 1.0 / (S ** 0.5)
    wc = jax.random.uniform(ks[1], (F, S), minval=-bound_c, maxval=bound_c,
                            dtype=jnp.float32)
    bc = jax.random.uniform(ks[2], (F,), minval=-bound_c, maxval=bound_c,
                            dtype=jnp.float32)
    w1, b1 = linear_init(ks[3], ks[4], H, H)
    w2, b2 = linear_init(ks[5], ks[6], H, H2)
    w3, b3 = linear_init(ks[7], ks[8], H2, C)

    params = (wc, bc, w1, b1, w2, b2, w3, b3)

    out = bgbert_forward(x, params)
    out = jax.block_until_ready(out)

    ref = _reference(x, params)
    assert out.shape == (B, C), f"bad output shape {out.shape}"
    assert jnp.allclose(out, ref, atol=1e-4, rtol=1e-4), "mismatch vs reference"
    assert jnp.allclose(jnp.sum(out, axis=-1), 1.0, atol=1e-4), "softmax rows must sum to 1"

    print("KERNEL_OK")
</pallas_src>

<mosaic_0001>
module attributes {stable_mosaic.version = 11 : i64} {
  func.func @_bgbert_kernel(%arg0: i32, %arg1: memref<2x8x32xbf16, #tpu.memory_space<vmem>>, %arg2: memref<4x8xbf16, #tpu.memory_space<vmem>>, %arg3: memref<4x1xf32, #tpu.memory_space<vmem>>, %arg4: memref<32x32xbf16, #tpu.memory_space<vmem>>, %arg5: memref<1x32xf32, #tpu.memory_space<vmem>>, %arg6: memref<32x16xbf16, #tpu.memory_space<vmem>>, %arg7: memref<1x16xf32, #tpu.memory_space<vmem>>, %arg8: memref<16x4xbf16, #tpu.memory_space<vmem>>, %arg9: memref<1x4xf32, #tpu.memory_space<vmem>>, %arg10: memref<2x4xf32, #tpu.memory_space<vmem>>) attributes {dimension_semantics = [#tpu.dimension_semantics<parallel>], iteration_bounds = array<i64: 1>, scalar_prefetch = 0 : i64, scratch_operands = 0 : i64, tpu.core_type = #tpu.core_type<tc>, window_params = [{transform_indices = @transform_0, window_bounds = array<i64: 2, 8, 32>}, {pipeline_mode = #tpu.pipeline_mode<synchronous>, transform_indices = @transform_1, window_bounds = array<i64: 4, 8>}, {pipeline_mode = #tpu.pipeline_mode<synchronous>, transform_indices = @transform_2, window_bounds = array<i64: 4, 1>}, {pipeline_mode = #tpu.pipeline_mode<synchronous>, transform_indices = @transform_3, window_bounds = array<i64: 32, 32>}, {pipeline_mode = #tpu.pipeline_mode<synchronous>, transform_indices = @transform_4, window_bounds = array<i64: 1, 32>}, {pipeline_mode = #tpu.pipeline_mode<synchronous>, transform_indices = @transform_5, window_bounds = array<i64: 32, 16>}, {pipeline_mode = #tpu.pipeline_mode<synchronous>, transform_indices = @transform_6, window_bounds = array<i64: 1, 16>}, {pipeline_mode = #tpu.pipeline_mode<synchronous>, transform_indices = @transform_7, window_bounds = array<i64: 16, 4>}, {pipeline_mode = #tpu.pipeline_mode<synchronous>, transform_indices = @transform_8, window_bounds = array<i64: 1, 4>}, {transform_indices = @transform_9, window_bounds = array<i64: 2, 4>}]} {
    %c0 = arith.constant 0 : index
    %c0_0 = arith.constant 0 : index
    %c0_1 = arith.constant 0 : index
    %0 = vector.load %arg1[%c0, %c0_0, %c0_1] : memref<2x8x32xbf16, #tpu.memory_space<vmem>>, vector<2x8x32xbf16>
    %c0_2 = arith.constant 0 : index
    %c0_3 = arith.constant 0 : index
    %1 = vector.load %arg2[%c0_2, %c0_3] : memref<4x8xbf16, #tpu.memory_space<vmem>>, vector<4x8xbf16>
    %2 = vector.shape_cast %1 : vector<4x8xbf16> to vector<1x4x8xbf16>
    %3 = vector.shape_cast %2 : vector<1x4x8xbf16> to vector<1x4x8xbf16>
    %4 = vector.broadcast %3 : vector<1x4x8xbf16> to vector<2x4x8xbf16>
    "tpu.trace_start"() <{level = 10 : i32, message = "bfs,bsh->bfh"}> : () -> ()
    %cst = arith.constant dense<0.000000e+00> : vector<2x4x32xf32>
    %5 = tpu.matmul %4, %0, %cst {dimension_numbers = #tpu.dot_dimension_numbers<[2], [1], [1], [2], [0, 0, 0, 1, 1, 2], [0], [0]>} : vector<2x4x8xbf16>, vector<2x8x32xbf16>, vector<2x4x32xf32> -> vector<2x4x32xf32>
    "tpu.trace_stop"() : () -> ()
    %c0_4 = arith.constant 0 : index
    %c0_5 = arith.constant 0 : index
    %6 = vector.load %arg3[%c0_4, %c0_5] : memref<4x1xf32, #tpu.memory_space<vmem>>, vector<4x1xf32>
    %7 = vector.shape_cast %6 : vector<4x1xf32> to vector<1x4x1xf32>
    %8 = vector.broadcast %7 : vector<1x4x1xf32> to vector<2x4x32xf32>
    %9 = arith.addf %5, %8 : vector<2x4x32xf32>
    %cst_6 = arith.constant 0.000000e+00 : f32
    %10 = vector.broadcast %cst_6 : f32 to vector<2x4x32xf32>
    %11 = arith.maximumf %9, %10 : vector<2x4x32xf32>
    %cst_7 = arith.constant dense<0.000000e+00> : vector<2x32xf32>
    %12 = vector.multi_reduction <add>, %11, %cst_7 [1] : vector<2x4x32xf32> to vector<2x32xf32>
    %cst_8 = arith.constant 2.500000e-01 : f32
    %13 = vector.broadcast %cst_8 : f32 to vector<2x32xf32>
    %14 = arith.mulf %12, %13 : vector<2x32xf32>
    %15 = arith.truncf %14 : vector<2x32xf32> to vector<2x32xbf16>
    %c0_9 = arith.constant 0 : index
    %c0_10 = arith.constant 0 : index
    %16 = vector.load %arg4[%c0_9, %c0_10] : memref<32x32xbf16, #tpu.memory_space<vmem>>, vector<32x32xbf16>
    %cst_11 = arith.constant dense<0.000000e+00> : vector<2x32xf32>
    %17 = tpu.matmul %15, %16, %cst_11 {dimension_numbers = #tpu.dot_dimension_numbers<[1], [0], [0], [1], [0, 0, 1, 1], [], []>} : vector<2x32xbf16>, vector<32x32xbf16>, vector<2x32xf32> -> vector<2x32xf32>
    %c0_12 = arith.constant 0 : index
    %c0_13 = arith.constant 0 : index
    %18 = vector.load %arg5[%c0_12, %c0_13] : memref<1x32xf32, #tpu.memory_space<vmem>>, vector<1x32xf32>
    %19 = vector.broadcast %18 : vector<1x32xf32> to vector<2x32xf32>
    %20 = arith.addf %17, %19 : vector<2x32xf32>
    %cst_14 = arith.constant 0.000000e+00 : f32
    %21 = vector.broadcast %cst_14 : f32 to vector<2x32xf32>
    %22 = arith.maximumf %20, %21 : vector<2x32xf32>
    %23 = arith.truncf %22 : vector<2x32xf32> to vector<2x32xbf16>
    %c0_15 = arith.constant 0 : index
    %c0_16 = arith.constant 0 : index
    %24 = vector.load %arg6[%c0_15, %c0_16] : memref<32x16xbf16, #tpu.memory_space<vmem>>, vector<32x16xbf16>
    %cst_17 = arith.constant dense<0.000000e+00> : vector<2x16xf32>
    %25 = tpu.matmul %23, %24, %cst_17 {dimension_numbers = #tpu.dot_dimension_numbers<[1], [0], [0], [1], [0, 0, 1, 1], [], []>} : vector<2x32xbf16>, vector<32x16xbf16>, vector<2x16xf32> -> vector<2x16xf32>
    %c0_18 = arith.constant 0 : index
    %c0_19 = arith.constant 0 : index
    %26 = vector.load %arg7[%c0_18, %c0_19] : memref<1x16xf32, #tpu.memory_space<vmem>>, vector<1x16xf32>
    %27 = vector.broadcast %26 : vector<1x16xf32> to vector<2x16xf32>
    %28 = arith.addf %25, %27 : vector<2x16xf32>
    %cst_20 = arith.constant 0.000000e+00 : f32
    %29 = vector.broadcast %cst_20 : f32 to vector<2x16xf32>
    %30 = arith.maximumf %28, %29 : vector<2x16xf32>
    %31 = arith.truncf %30 : vector<2x16xf32> to vector<2x16xbf16>
    %c0_21 = arith.constant 0 : index
    %c0_22 = arith.constant 0 : index
    %32 = vector.load %arg8[%c0_21, %c0_22] : memref<16x4xbf16, #tpu.memory_space<vmem>>, vector<16x4xbf16>
    %cst_23 = arith.constant dense<0.000000e+00> : vector<2x4xf32>
    %33 = tpu.matmul %31, %32, %cst_23 {dimension_numbers = #tpu.dot_dimension_numbers<[1], [0], [0], [1], [0, 0, 1, 1], [], []>} : vector<2x16xbf16>, vector<16x4xbf16>, vector<2x4xf32> -> vector<2x4xf32>
    %c0_24 = arith.constant 0 : index
    %c0_25 = arith.constant 0 : index
    %34 = vector.load %arg9[%c0_24, %c0_25] : memref<1x4xf32, #tpu.memory_space<vmem>>, vector<1x4xf32>
    %35 = vector.broadcast %34 : vector<1x4xf32> to vector<2x4xf32>
    %36 = arith.addf %33, %35 : vector<2x4xf32>
    %cst_26 = arith.constant dense<0xFF800000> : vector<2xf32>
    %37 = vector.multi_reduction <maximumf>, %36, %cst_26 [1] : vector<2x4xf32> to vector<2xf32>
    %38 = vector.shape_cast %37 : vector<2xf32> to vector<2x1xf32>
    %39 = vector.broadcast %38 : vector<2x1xf32> to vector<2x4xf32>
    %40 = arith.subf %36, %39 : vector<2x4xf32>
    %41 = math.exp %40 : vector<2x4xf32>
    %cst_27 = arith.constant dense<0.000000e+00> : vector<2xf32>
    %42 = vector.multi_reduction <add>, %41, %cst_27 [1] : vector<2x4xf32> to vector<2xf32>
    %43 = vector.shape_cast %42 : vector<2xf32> to vector<2x1xf32>
    %44 = vector.broadcast %43 : vector<2x1xf32> to vector<2x4xf32>
    %45 = arith.divf %41, %44 : vector<2x4xf32>
    %c0_28 = arith.constant 0 : index
    %c0_29 = arith.constant 0 : index
    %46 = vector.load %arg10[%c0_28, %c0_29] : memref<2x4xf32, #tpu.memory_space<vmem>>, vector<2x4xf32>
    tpu.vector_store %arg10[%c0_28, %c0_29], %45 {strides = array<i32>} : memref<2x4xf32, #tpu.memory_space<vmem>>, vector<2x4xf32>,
    return
  }
  func.func @transform_0(%arg0: i32) -> (i32, i32, i32) {
    %c0_i32 = arith.constant 0 : i32
    %c0_i32_0 = arith.constant 0 : i32
    %c0_i32_1 = arith.constant 0 : i32
    return %arg0, %c0_i32, %c0_i32_0 : i32, i32, i32
  }
  func.func @transform_1(%arg0: i32) -> (i32, i32) {
    %c0_i32 = arith.constant 0 : i32
    %c0_i32_0 = arith.constant 0 : i32
    %c0_i32_1 = arith.constant 0 : i32
    return %c0_i32, %c0_i32_0 : i32, i32
  }
  func.func @transform_2(%arg0: i32) -> (i32, i32) {
    %c0_i32 = arith.constant 0 : i32
    %c0_i32_0 = arith.constant 0 : i32
    %c0_i32_1 = arith.constant 0 : i32
    return %c0_i32, %c0_i32_0 : i32, i32
  }
  func.func @transform_3(%arg0: i32) -> (i32, i32) {
    %c0_i32 = arith.constant 0 : i32
    %c0_i32_0 = arith.constant 0 : i32
    %c0_i32_1 = arith.constant 0 : i32
    return %c0_i32, %c0_i32_0 : i32, i32
  }
  func.func @transform_4(%arg0: i32) -> (i32, i32) {
    %c0_i32 = arith.constant 0 : i32
    %c0_i32_0 = arith.constant 0 : i32
    %c0_i32_1 = arith.constant 0 : i32
    return %c0_i32, %c0_i32_0 : i32, i32
  }
  func.func @transform_5(%arg0: i32) -> (i32, i32) {
    %c0_i32 = arith.constant 0 : i32
    %c0_i32_0 = arith.constant 0 : i32
    %c0_i32_1 = arith.constant 0 : i32
    return %c0_i32, %c0_i32_0 : i32, i32
  }
  func.func @transform_6(%arg0: i32) -> (i32, i32) {
    %c0_i32 = arith.constant 0 : i32
    %c0_i32_0 = arith.constant 0 : i32
    %c0_i32_1 = arith.constant 0 : i32
    return %c0_i32, %c0_i32_0 : i32, i32
  }
  func.func @transform_7(%arg0: i32) -> (i32, i32) {
    %c0_i32 = arith.constant 0 : i32
    %c0_i32_0 = arith.constant 0 : i32
    %c0_i32_1 = arith.constant 0 : i32
    return %c0_i32, %c0_i32_0 : i32, i32
  }
  func.func @transform_8(%arg0: i32) -> (i32, i32) {
    %c0_i32 = arith.constant 0 : i32
    %c0_i32_0 = arith.constant 0 : i32
    %c0_i32_1 = arith.constant 0 : i32
    return %c0_i32, %c0_i32_0 : i32, i32
  }
  func.func @transform_9(%arg0: i32) -> (i32, i32) {
    %c0_i32 = arith.constant 0 : i32
    %c0_i32_0 = arith.constant 0 : i32
    return %arg0, %c0_i32 : i32, i32
  }
}

</mosaic_0001>

<bundles_post_ra>
// kernel: tpu_custom_call.1
= control target key start
LH: loop header
LB: loop body
LE: loop exit
PB: predicated region body
PF: predicated region fallthrough
CT: control target
= control target key end

     0   :  { %vm47_vm0 = vcmask 1043456   ;;  %v480_v2 = vmov 0.0   ;;  %vm43_vm1 = vcmask 64512   ;;  %vm481_vm2 = vmmov 0   ;;  %s595_s0 = inlined_call_operand.vmem [shape: bf16[2,8,32], index: 0, kind: input, shape index: {}]   ;;  %s596_s1 = inlined_call_operand.vmem [shape: bf16[4,8], index: 1, kind: input, shape index: {}]   ;;  %s597_s2 = inlined_call_operand.vmem [shape: f32[4,1], index: 2, kind: input, shape index: {}]   ;;  %s598_s3 = inlined_call_operand.vmem [shape: bf16[32,32], index: 3, kind: input, shape index: {}]   ;;  %s599_s4 = inlined_call_operand.vmem [shape: f32[1,32], index: 4, kind: input, shape index: {}]   ;;  %s600_s5 = inlined_call_operand.vmem [shape: bf16[32,16], index: 5, kind: input, shape index: {}]   ;;  %s601_s6 = inlined_call_operand.vmem [shape: f32[1,16], index: 6, kind: input, shape index: {}]   ;;  %s602_s7 = inlined_call_operand.vmem [shape: bf16[16,4], index: 7, kind: input, shape index: {}]   ;;  %s603_s8 = inlined_call_operand.vmem [shape: f32[1,4], index: 8, kind: input, shape index: {}]   ;;  %s604_s9 = inlined_call_operand.hbm [shape: f32[2,4], index: 9, kind: output, shape index: {}]  }
   0x1   :  { %v34_v0 = vld [vmem:[%s595_s0] sm:$0xf]  ;;  %v35_v1 = vld [vmem:[%s595_s0 + $0x4] sm:$0xf]  ;;  %410 = vmatprep.subr.bf16.mxu0 %v480_v2  ;;  %416 = vmatprep.subr.bf16.mxu1 %v480_v2  ;;  %v482_v7 = vmov 0  }
   0x2   :  { %v49_v3 = vsel %vm47_vm0, %v34_v0, 0  ;;  %v92_v4 = vsel %vm47_vm0, %v35_v1, 0  ;;  %v36_v5 = vld [vmem:[%s596_s1] sm:$0x3]  ;;  %412 = vmatprep.mubr.msk.bf16.mxu0 %vm481_vm2, %v480_v2  ;;  %418 = vmatprep.mubr.msk.bf16.mxu1 %vm481_vm2, %v480_v2 }
   0x3   :  { %411 = vmatpush3.bf16.msra.mxu0 %v49_v3  ;;  %417 = vmatpush3.bf16.msra.mxu1 %v92_v4  ;;  %v37_v6 = vld [vmem:[%s597_s2] sm:$0xf] }
   0x4   :  { %448 = vset.pattern.permute.xlu0 %v482_v7  ;;  %422 = vmatprep.subr.bf16.mxu0 %v480_v2 }
   0x5   :  { %40 = vperm.xlu0 %448, %v37_v6  }
   0x6   :  { %413 = vmatmul.mubr.msk.bf16.vlgmr.msra.gmra.mxu0 %vm43_vm1, %v36_v5  ;;  %419 = vmatmul.mubr.msk.bf16.vlgmr.msra.gmra.mxu1 %vm43_vm1, %v36_v5 }
   0x7   :  { %426 = vmatprep.mubr.msk.bf16.mxu0 %vm481_vm2, %v480_v2 }
   0x8   :  { %14 = vsyncpa [#allocation3], 0  ;;  %430 = vmatprep.subr.bf16.mxu1 %v480_v2  ;;  %434 = vmatprep.mubr.msk.bf16.mxu1 %vm481_vm2, %v480_v2  ;;  %v449_v8 = vld [vmem:[%s598_s3 + $0x8] sm:$0xff]   ;;  %v450_v9 = vld [vmem:[%s598_s3] sm:$0xff]   ;;  %vm136_vm3 = vcmask 257024   ;;  %vm170_vm4 = vcmask 1041409  }
   0x9   :  { %423 = vmatpush3.bf16.msra.mxu0 %v449_v8  ;;  %v451_v10 = vld [vmem:[%s600_s5 + $0x8] sm:$0xff]   ;;  %vm185_vm5 = vcmask 261120   ;;  %v452_v46 = vld [vmem:[%s600_s5] sm:$0xff]   ;;  %vm314_vm6 = vcmask 130048   ;;  %vm358_vm7 = vcmask 25600  }
   0xa   :  { %424 = vmatprep.subr.bf16.mxu0 %v480_v2  ;;  %431 = vmatpush3.bf16.msra.mxu1 %v451_v10  ;;  %v453_v47 = vld [vmem:[%s602_s7] sm:$0xff]  }
   0xb   :  { %432 = vmatprep.subr.bf16.mxu1 %v480_v2  ;;  %v387_v48 = vld [vmem:[%s599_s4] ss:$0 sm:$0xff] }
   0xc   :  { %v391_v56 = vld [vmem:[%s601_s6] ss:$0 sm:$0xff]  ;;  %s483_s6 = smov [#allocation2]  }
   0xd   :  { %425 = vmatpush3.bf16.msra.mxu0 %v450_v9  ;;  %v395_v0 = vld [vmem:[%s603_s8] ss:$0 sm:$0xff]  ;;  %s377_s8 = sshll.u32 %s483_s6, 4  ;;  %s378_s8 = int_to_ptr.vmem [resolvable:$true] %s377_s8 }
   0xe   :  { %438 = vmatprep.subr.bf16.mxu0 %v480_v2  ;;  %433 = vmatpush3.bf16.msra.mxu1 %v452_v46  ;;  %s458_s26 = scalar_lea.vmem %s378_s8, 32  ;;  %p463_p1 = scmp.lt.s32.totalorder %s378_s8, %s378_s8 }
   0xf   :  { %p459_p0 = scmp.ne.s32.totalorder %s378_s8, %s458_s26  ;;  %p464_p2 = scmp.lt.s32.totalorder %s458_s26, %s458_s26 }
  0x11   :  { %p465_p3 = por %p464_p2, %p463_p1 }
  0x13   :  { %p466_p4 = pnand %p465_p3, %p459_p0 }
  0x80   :  { %v41_v11 = vpop.permute.xlu0 %40 }
  0xc6   :  { %v85_v12 = vpop.f32.mrf.mxu0  ;;  %v128_v13 = vpop.f32.mrf.mxu1 }
  0xc7   :  { %v86_v14 = vadd.f32 %v85_v12, %v41_v11  ;;  %v129_v15 = vadd.f32 %v128_v13, %v41_v11 }
  0xc8   :  { %v414_v16 = vpop.f32.mrf.mxu0  ;;  %v420_v17 = vpop.f32.mrf.mxu1 }
  0xc9   :  { %v134_v18 = vmax.f32 %v86_v14, 0.0  ;;  %v135_v19 = vmax.f32 %v129_v15, 0.0 }
  0xca   :  { %v88_v20 = vpop.f32.mrf.mxu0  ;;  %v131_v21 = vpop.f32.mrf.mxu1 }
  0xcb   :  { %v137_v22 = vsel %vm136_vm3, %v134_v18, 0.0  ;;  %v144_v23 = vsel %vm136_vm3, %v135_v19, 0.0 }
  0xcc   :  { %v138_v24 = vrot.slane %v137_v22, 4  ;;  %v145_v25 = vrot.slane %v144_v23, 4  ;;  %v415_v26 = vpop.f32.mrf.mxu0  ;;  %v421_v27 = vpop.f32.mrf.mxu1 }
  0xce   :  { %v139_v28 = vadd.f32 %v138_v24, %v137_v22  ;;  %v146_v29 = vadd.f32 %v145_v25, %v144_v23 }
  0xd0   :  { %v140_v30 = vrot.slane %v139_v28, 2  ;;  %v147_v31 = vrot.slane %v146_v29, 2 }
  0xd2   :  { %v141_v32 = vadd.f32 %v140_v30, %v139_v28  ;;  %v148_v33 = vadd.f32 %v147_v31, %v146_v29 }
  0xd4   :  { %v142_v34 = vrot.slane %v141_v32, 1  ;;  %v149_v35 = vrot.slane %v148_v33, 1 }
  0xd6   :  { %v143_v36 = vadd.f32 %v142_v34, %v141_v32  ;;  %v150_v37 = vadd.f32 %v149_v35, %v148_v33 }
  0xd8   :  { %v151_v38 = vmul.f32 0.25, %v143_v36  ;;  %v152_v39 = vmul.f32 0.25, %v150_v37 }
  0xda   :  { %v153_v40 = vpack.c.bf16 %v151_v38, %v151_v38  ;;  %v154_v41 = vpack.c.bf16 %v152_v39, %v152_v39 }
  0xdc   :  { %v168_v42 = vunpack.c.l.b16 %v153_v40  ;;  %v169_v43 = vunpack.c.l.b16 %v154_v41 }
  0xde   :  { %v171_v44 = vsel %vm170_vm4, %v169_v43, %v168_v42 }
  0xdf   :  { %v172_v45 = vpack.c.b16 %v171_v44, %v171_v44 }
  0xe1   :  { %427 = vmatmul.mubr.msk.bf16.vlgmr.msra.gmra.mxu0 %vm185_vm5, %v172_v45 }
  0xe2   :  { %440 = vmatprep.mubr.msk.bf16.mxu0 %vm481_vm2, %v480_v2  ;;  %439 = vmatpush3.bf16.msra.mxu0 %v453_v47 }
 0x1a1   :  { %v223_v49 = vpop.f32.mrf.mxu0 }
 0x1a2   :  { %v224_v50 = vadd.f32 %v387_v48, %v223_v49 }
 0x1a3   :  { %v428_v51 = vpop.f32.mrf.mxu0 }
 0x1a4   :  { %v229_v52 = vmax.f32 %v224_v50, 0.0 }
 0x1a5   :  { %v226_v53 = vpop.f32.mrf.mxu0 }
 0x1a6   :  { %v230_v54 = vpack.c.bf16 %v229_v52, %v229_v52 }
 0x1a7   :  { %v429_v55 = vpop.f32.mrf.mxu0 }
 0x1a8   :  { %435 = vmatmul.mubr.msk.bf16.vlgmr.msra.gmra.mxu1 %vm185_vm5, %v230_v54 }
 0x268   :  { %v291_v57 = vpop.f32.mrf.mxu1 }
 0x269   :  { %v292_v58 = vadd.f32 %v391_v56, %v291_v57 }
 0x26a   :  { %v436_v59 = vpop.f32.mrf.mxu1 }
 0x26b   :  { %v297_v60 = vmax.f32 %v292_v58, 0.0 }
 0x26c   :  { %v294_v61 = vpop.f32.mrf.mxu1 }
 0x26d   :  { %v298_v62 = vpack.c.bf16 %v297_v60, %v297_v60 }
 0x26e   :  { %v437_v63 = vpop.f32.mrf.mxu1 }
 0x26f   :  { %441 = vmatmul.mubr.msk.bf16.vlgmr.msra.gmra.mxu0 %vm314_vm6, %v298_v62 }
 0x32f   :  { %v352_v1 = vpop.f32.mrf.mxu0 }
 0x330   :  { %v353_v2 = vadd.f32 %v395_v0, %v352_v1 }
 0x331   :  { %v442_v3 = vpop.f32.mrf.mxu0 }
 0x332   :  { %v359_v4 = vsel %vm358_vm7, %v353_v2, -inf }
 0x333   :  { %360 = vmax.xlane.f32.xlu0 %v359_v4  ;;  %v355_v5 = vpop.f32.mrf.mxu0 }
 0x335   :  { %v443_v6 = vpop.f32.mrf.mxu0 }
 0x3bc   :  { %v361_v7 = vpop.xlane.xlu0 %360 }
 0x3bd   :  { %v362_v8 = vsub.f32 %v353_v2, %v361_v7 }
 0x3bf   :  { %v363_v9 = vmul.f32 1.442695, %v362_v8 }
 0x3c1   :  { %454 = vpow2.f32 %v363_v9 }
 0x3ce   :  { %v455_v10 = vpop.eup %454 }
 0x3cf   :  { %v365_v11 = vsel %vm358_vm7, %v455_v10, 0.0 }
 0x3d0   :  { %366 = vadd.xlane.f32.xlu1 %v365_v11 }
 0x459   :  { %v367_v12 = vpop.xlane.xlu1 %366 }
 0x45a   :  { %456 = vrcp.f32 %v367_v12 }
 0x467   :  { %v457_v13 = vpop.eup %456 }
 0x468   :  { %v369_v14 = vmul.f32 %v457_v13, %v455_v10 }
 0x46a   :  { %370 = vst.msk [vmem:[#allocation2] sm:$0x3] %vm358_vm7, %v369_v14 }
 0x46b   :  { %469 = shalt.err (!%p466_p4)
}
 0x46c   :  { %380 = dma.vmem_to_hbm [thread:$0]  %s378_s8, 32, %s604_s9, [#allocation3]  }
 0x46d   :  { %478 = dma.done.wait [#allocation3], 32  }
 0x46e   :  { %479 = vsyncadd [#allocation3], 4294967264 }
 0x46f   :  { %384 = vsyncpa [#allocation3], 1 }

</bundles_post_ra>
